<compile_context>
chip_gen: v6e
topology: v6e:2x2x1
jax: 0.10.0
libtpu: 0.0.40
codegen_flags: <defaults>
</compile_context>

<pallas_src>
import jax
import jax.numpy as jnp
from jax.experimental import pallas as pl
from jax.experimental.pallas import tpu as pltpu


def _round_up(x, m):
    return ((x + m - 1) // m) * m


def _critic_kernel(state_ref, action_ref, w1s_ref, w1a_ref, b1_ref,
                   w2_ref, b2_ref, w3_ref, b3_ref, o_ref):
    # Fused (state|action) @ W1 without ever materializing the concat.
    h1 = (jnp.dot(state_ref[...], w1s_ref[...],
                  preferred_element_type=jnp.float32)
          + jnp.dot(action_ref[...], w1a_ref[...],
                    preferred_element_type=jnp.float32)
          + b1_ref[...])
    h1 = jnp.maximum(h1, 0.0)

    h2 = jnp.dot(h1.astype(jnp.bfloat16), w2_ref[...],
                 preferred_element_type=jnp.float32) + b2_ref[...]
    h2 = jnp.maximum(h2, 0.0)

    # Final [H, 1] layer as VPU multiply + lane reduction (keeps the MXU and
    # its result FIFO free; an N=1 matmul would use a single result column).
    v = jnp.sum(h2 * w3_ref[...], axis=-1, keepdims=True) + b3_ref[...]
    o_ref[...] = v.astype(o_ref.dtype)


def prepare_critic_params(params, state_dim, hidden_pad=128):
    """Convert logical f32 params ([in, out] layout) into kernel params:
    hidden padded to `hidden_pad`, W1 split by (state, action), matmul
    weights in bf16, biases / final row in f32. Zero-padding + ReLU(0)=0
    keeps numerics identical to the unpadded network."""
    w1, b1, w2, b2, w3, b3 = params            # w*: [in, out]; b*: [1, out]
    hp = max(hidden_pad, w1.shape[1])

    pad_c = lambda a: jnp.pad(a, ((0, 0), (0, hp - a.shape[1])))
    pad_r = lambda a: jnp.pad(a, ((0, hp - a.shape[0]), (0, 0)))

    w1p = pad_c(w1)                              # [in, Hp]
    w1s = w1p[:state_dim].astype(jnp.bfloat16)   # [Ds, Hp]  bf16
    w1a = w1p[state_dim:].astype(jnp.bfloat16)   # [Da, Hp]  bf16
    b1p = pad_c(b1)                              # [1, Hp]   f32
    w2p = pad_c(pad_r(w2)).astype(jnp.bfloat16)  # [Hp, Hp]  bf16
    b2p = pad_c(b2)                              # [1, Hp]   f32
    w3r = pad_r(w3).T                            # [1, Hp]   f32 row (VPU reduce)
    return (w1s, w1a, b1p, w2p, b2p, w3r, b3)    # b3: [1, 1] f32


def critic_forward(state, action, kernel_params, *, block_b=512):
    """Fused Critic MLP. `kernel_params` come from prepare_critic_params."""
    w1s, w1a, b1, w2, b2, w3_row, b3 = kernel_params
    B, state_dim = state.shape
    action_dim = action.shape[1]
    H = w2.shape[0]

    # Batch tile: >=128 and a multiple of 128 (bf16 sublane-aligned); large
    # blocks get pipelined double-buffered DMA for free. Pad batch up to it.
    tb = min(block_b, _round_up(max(B, 1), 128))
    b_pad = _round_up(B, tb)
    if b_pad != B:
        state = jnp.pad(state, ((0, b_pad - B), (0, 0)))
        action = jnp.pad(action, ((0, b_pad - B), (0, 0)))

    # bf16 activations: half the HBM bytes on the dominant input stream.
    state = state.astype(jnp.bfloat16)
    action = action.astype(jnp.bfloat16)

    num_tiles = b_pad // tb
    full2d = lambda a: pl.BlockSpec(a.shape, lambda i: (0, 0))

    flops = 2 * b_pad * ((state_dim + action_dim) * H + H * H + H)
    bytes_accessed = (
        b_pad * (state_dim + action_dim) * 2        # bf16 activations in
        + b_pad * 4                                  # f32 values out
        + ((state_dim + action_dim) * H + H * H) * 2  # bf16 weights
        + (3 * H + 1) * 4)                           # f32 biases + w3 row

    out = pl.pallas_call(
        _critic_kernel,
        out_shape=jax.ShapeDtypeStruct((b_pad, 1), jnp.float32),
        grid=(num_tiles,),
        in_specs=[
            pl.BlockSpec((tb, state_dim), lambda i: (i, 0)),
            pl.BlockSpec((tb, action_dim), lambda i: (i, 0)),
            full2d(w1s), full2d(w1a), full2d(b1),
            full2d(w2), full2d(b2), full2d(w3_row), full2d(b3),
        ],
        out_specs=pl.BlockSpec((tb, 1), lambda i: (i, 0)),
        compiler_params=pltpu.CompilerParams(
            dimension_semantics=("parallel",)),
        cost_estimate=pl.CostEstimate(
            flops=flops, transcendentals=0, bytes_accessed=bytes_accessed),
    )(state, action, w1s, w1a, b1, w2, b2, w3_row, b3)
    return out[:B]


def init_critic_params(key, input_dim, output_dim=1, hidden_dim=64):
    """Deterministic init mimicking torch.nn.Linear default
    (U[-1/sqrt(fan_in), +1/sqrt(fan_in)]). Weights stored [in, out]."""
    keys = jax.random.split(key, 6)

    def linear(kw, kb, fan_in, fan_out):
        bound = 1.0 / jnp.sqrt(fan_in)
        w = jax.random.uniform(kw, (fan_in, fan_out), jnp.float32, -bound, bound)
        b = jax.random.uniform(kb, (1, fan_out), jnp.float32, -bound, bound)
        return w, b

    w1, b1 = linear(keys[0], keys[1], input_dim, hidden_dim)
    w2, b2 = linear(keys[2], keys[3], hidden_dim, hidden_dim)
    w3, b3 = linear(keys[4], keys[5], hidden_dim, output_dim)
    return (w1, b1, w2, b2, w3, b3)


def critic_reference(state, action, params):
    """Pure-JAX f32 reference for correctness check."""
    x = jnp.concatenate([state, action], axis=1)
    w1, b1, w2, b2, w3, b3 = params
    h1 = jnp.maximum(x @ w1 + b1, 0.0)
    h2 = jnp.maximum(h1 @ w2 + b2, 0.0)
    return h2 @ w3 + b3


if __name__ == "__main__":
    key = jax.random.PRNGKey(0)
    k_state, k_action, k_params = jax.random.split(key, 3)

    batch = 2
    state_dim = 8
    action_dim = 4
    hidden_dim = 64
    output_dim = 1
    input_dim = state_dim + action_dim

    state = jax.random.normal(k_state, (batch, state_dim), jnp.float32)
    action = jax.random.normal(k_action, (batch, action_dim), jnp.float32)
    params = init_critic_params(k_params, input_dim, output_dim, hidden_dim)
    kernel_params = prepare_critic_params(params, state_dim)

    value = critic_forward(state, action, kernel_params)
    value = jax.block_until_ready(value)
    ref = critic_reference(state, action, params)
    assert value.shape == (batch, output_dim), value.shape
    # bf16 matmul inputs (f32 accumulation) -> relaxed tolerance vs f32 ref.
    assert jnp.allclose(value, ref, atol=5e-2, rtol=5e-2), (value, ref)

    # Exercise the multi-tile path (grid > 1 plus a padded batch tail).
    big_b = 1030
    kb_s, kb_a = jax.random.split(jax.random.PRNGKey(1), 2)
    big_state = jax.random.normal(kb_s, (big_b, state_dim), jnp.float32)
    big_action = jax.random.normal(kb_a, (big_b, action_dim), jnp.float32)
    big_value = jax.block_until_ready(
        critic_forward(big_state, big_action, kernel_params))
    big_ref = critic_reference(big_state, big_action, params)
    assert big_value.shape == (big_b, output_dim), big_value.shape
    assert jnp.allclose(big_value, big_ref, atol=5e-2, rtol=5e-2)

    print("KERNEL_OK")
</pallas_src>

<mosaic_0001>
module attributes {stable_mosaic.version = 11 : i64} {
  func.func @_critic_kernel(%arg0: i32, %arg1: memref<128x8xbf16, #tpu.memory_space<vmem>>, %arg2: memref<128x4xbf16, #tpu.memory_space<vmem>>, %arg3: memref<8x128xbf16, #tpu.memory_space<vmem>>, %arg4: memref<4x128xbf16, #tpu.memory_space<vmem>>, %arg5: memref<1x128xf32, #tpu.memory_space<vmem>>, %arg6: memref<128x128xbf16, #tpu.memory_space<vmem>>, %arg7: memref<1x128xf32, #tpu.memory_space<vmem>>, %arg8: memref<1x128xf32, #tpu.memory_space<vmem>>, %arg9: memref<1x1xf32, #tpu.memory_space<vmem>>, %arg10: memref<128x1xf32, #tpu.memory_space<vmem>>) attributes {dimension_semantics = [#tpu.dimension_semantics<parallel>], iteration_bounds = array<i64: 1>, scalar_prefetch = 0 : i64, scratch_operands = 0 : i64, tpu.core_type = #tpu.core_type<tc>, window_params = [{transform_indices = @transform_0, window_bounds = array<i64: 128, 8>}, {transform_indices = @transform_1, window_bounds = array<i64: 128, 4>}, {pipeline_mode = #tpu.pipeline_mode<synchronous>, transform_indices = @transform_2, window_bounds = array<i64: 8, 128>}, {pipeline_mode = #tpu.pipeline_mode<synchronous>, transform_indices = @transform_3, window_bounds = array<i64: 4, 128>}, {pipeline_mode = #tpu.pipeline_mode<synchronous>, transform_indices = @transform_4, window_bounds = array<i64: 1, 128>}, {pipeline_mode = #tpu.pipeline_mode<synchronous>, transform_indices = @transform_5, window_bounds = array<i64: 128, 128>}, {pipeline_mode = #tpu.pipeline_mode<synchronous>, transform_indices = @transform_6, window_bounds = array<i64: 1, 128>}, {pipeline_mode = #tpu.pipeline_mode<synchronous>, transform_indices = @transform_7, window_bounds = array<i64: 1, 128>}, {pipeline_mode = #tpu.pipeline_mode<synchronous>, transform_indices = @transform_8, window_bounds = array<i64: 1, 1>}, {transform_indices = @transform_9, window_bounds = array<i64: 128, 1>}]} {
    %c0 = arith.constant 0 : index
    %c0_0 = arith.constant 0 : index
    %0 = vector.load %arg1[%c0, %c0_0] : memref<128x8xbf16, #tpu.memory_space<vmem>>, vector<128x8xbf16>
    %c0_1 = arith.constant 0 : index
    %c0_2 = arith.constant 0 : index
    %1 = vector.load %arg3[%c0_1, %c0_2] : memref<8x128xbf16, #tpu.memory_space<vmem>>, vector<8x128xbf16>
    %cst = arith.constant dense<0.000000e+00> : vector<128x128xf32>
    %2 = tpu.matmul %0, %1, %cst {dimension_numbers = #tpu.dot_dimension_numbers<[1], [0], [0], [1], [0, 0, 1, 1], [], []>} : vector<128x8xbf16>, vector<8x128xbf16>, vector<128x128xf32> -> vector<128x128xf32>
    %c0_3 = arith.constant 0 : index
    %c0_4 = arith.constant 0 : index
    %3 = vector.load %arg2[%c0_3, %c0_4] : memref<128x4xbf16, #tpu.memory_space<vmem>>, vector<128x4xbf16>
    %c0_5 = arith.constant 0 : index
    %c0_6 = arith.constant 0 : index
    %4 = vector.load %arg4[%c0_5, %c0_6] : memref<4x128xbf16, #tpu.memory_space<vmem>>, vector<4x128xbf16>
    %cst_7 = arith.constant dense<0.000000e+00> : vector<128x128xf32>
    %5 = tpu.matmul %3, %4, %cst_7 {dimension_numbers = #tpu.dot_dimension_numbers<[1], [0], [0], [1], [0, 0, 1, 1], [], []>} : vector<128x4xbf16>, vector<4x128xbf16>, vector<128x128xf32> -> vector<128x128xf32>
    %6 = arith.addf %2, %5 : vector<128x128xf32>
    %c0_8 = arith.constant 0 : index
    %c0_9 = arith.constant 0 : index
    %7 = vector.load %arg5[%c0_8, %c0_9] : memref<1x128xf32, #tpu.memory_space<vmem>>, vector<1x128xf32>
    %8 = vector.broadcast %7 : vector<1x128xf32> to vector<128x128xf32>
    %9 = arith.addf %6, %8 : vector<128x128xf32>
    %cst_10 = arith.constant 0.000000e+00 : f32
    %10 = vector.broadcast %cst_10 : f32 to vector<128x128xf32>
    %11 = arith.maximumf %9, %10 : vector<128x128xf32>
    %12 = arith.truncf %11 : vector<128x128xf32> to vector<128x128xbf16>
    %c0_11 = arith.constant 0 : index
    %c0_12 = arith.constant 0 : index
    %13 = vector.load %arg6[%c0_11, %c0_12] : memref<128x128xbf16, #tpu.memory_space<vmem>>, vector<128x128xbf16>
    %cst_13 = arith.constant dense<0.000000e+00> : vector<128x128xf32>
    %14 = tpu.matmul %12, %13, %cst_13 {dimension_numbers = #tpu.dot_dimension_numbers<[1], [0], [0], [1], [0, 0, 1, 1], [], []>} : vector<128x128xbf16>, vector<128x128xbf16>, vector<128x128xf32> -> vector<128x128xf32>
    %c0_14 = arith.constant 0 : index
    %c0_15 = arith.constant 0 : index
    %15 = vector.load %arg7[%c0_14, %c0_15] : memref<1x128xf32, #tpu.memory_space<vmem>>, vector<1x128xf32>
    %16 = vector.broadcast %15 : vector<1x128xf32> to vector<128x128xf32>
    %17 = arith.addf %14, %16 : vector<128x128xf32>
    %cst_16 = arith.constant 0.000000e+00 : f32
    %18 = vector.broadcast %cst_16 : f32 to vector<128x128xf32>
    %19 = arith.maximumf %17, %18 : vector<128x128xf32>
    %c0_17 = arith.constant 0 : index
    %c0_18 = arith.constant 0 : index
    %20 = vector.load %arg8[%c0_17, %c0_18] : memref<1x128xf32, #tpu.memory_space<vmem>>, vector<1x128xf32>
    %21 = vector.broadcast %20 : vector<1x128xf32> to vector<128x128xf32>
    %22 = arith.mulf %19, %21 : vector<128x128xf32>
    %cst_19 = arith.constant dense<0.000000e+00> : vector<128xf32>
    %23 = vector.multi_reduction <add>, %22, %cst_19 [1] : vector<128x128xf32> to vector<128xf32>
    %24 = vector.shape_cast %23 : vector<128xf32> to vector<128x1xf32>
    %c0_20 = arith.constant 0 : index
    %c0_21 = arith.constant 0 : index
    %25 = vector.load %arg9[%c0_20, %c0_21] : memref<1x1xf32, #tpu.memory_space<vmem>>, vector<1x1xf32>
    %26 = vector.broadcast %25 : vector<1x1xf32> to vector<128x1xf32>
    %27 = arith.addf %24, %26 : vector<128x1xf32>
    %c0_22 = arith.constant 0 : index
    %c0_23 = arith.constant 0 : index
    %28 = vector.load %arg10[%c0_22, %c0_23] : memref<128x1xf32, #tpu.memory_space<vmem>>, vector<128x1xf32>
    tpu.vector_store %arg10[%c0_22, %c0_23], %27 {strides = array<i32>} : memref<128x1xf32, #tpu.memory_space<vmem>>, vector<128x1xf32>,
    return
  }
  func.func @transform_0(%arg0: i32) -> (i32, i32) {
    %c0_i32 = arith.constant 0 : i32
    %c0_i32_0 = arith.constant 0 : i32
    return %arg0, %c0_i32 : i32, i32
  }
  func.func @transform_1(%arg0: i32) -> (i32, i32) {
    %c0_i32 = arith.constant 0 : i32
    %c0_i32_0 = arith.constant 0 : i32
    return %arg0, %c0_i32 : i32, i32
  }
  func.func @transform_2(%arg0: i32) -> (i32, i32) {
    %c0_i32 = arith.constant 0 : i32
    %c0_i32_0 = arith.constant 0 : i32
    %c0_i32_1 = arith.constant 0 : i32
    return %c0_i32, %c0_i32_0 : i32, i32
  }
  func.func @transform_3(%arg0: i32) -> (i32, i32) {
    %c0_i32 = arith.constant 0 : i32
    %c0_i32_0 = arith.constant 0 : i32
    %c0_i32_1 = arith.constant 0 : i32
    return %c0_i32, %c0_i32_0 : i32, i32
  }
  func.func @transform_4(%arg0: i32) -> (i32, i32) {
    %c0_i32 = arith.constant 0 : i32
    %c0_i32_0 = arith.constant 0 : i32
    %c0_i32_1 = arith.constant 0 : i32
    return %c0_i32, %c0_i32_0 : i32, i32
  }
  func.func @transform_5(%arg0: i32) -> (i32, i32) {
    %c0_i32 = arith.constant 0 : i32
    %c0_i32_0 = arith.constant 0 : i32
    %c0_i32_1 = arith.constant 0 : i32
    return %c0_i32, %c0_i32_0 : i32, i32
  }
  func.func @transform_6(%arg0: i32) -> (i32, i32) {
    %c0_i32 = arith.constant 0 : i32
    %c0_i32_0 = arith.constant 0 : i32
    %c0_i32_1 = arith.constant 0 : i32
    return %c0_i32, %c0_i32_0 : i32, i32
  }
  func.func @transform_7(%arg0: i32) -> (i32, i32) {
    %c0_i32 = arith.constant 0 : i32
    %c0_i32_0 = arith.constant 0 : i32
    %c0_i32_1 = arith.constant 0 : i32
    return %c0_i32, %c0_i32_0 : i32, i32
  }
  func.func @transform_8(%arg0: i32) -> (i32, i32) {
    %c0_i32 = arith.constant 0 : i32
    %c0_i32_0 = arith.constant 0 : i32
    %c0_i32_1 = arith.constant 0 : i32
    return %c0_i32, %c0_i32_0 : i32, i32
  }
  func.func @transform_9(%arg0: i32) -> (i32, i32) {
    %c0_i32 = arith.constant 0 : i32
    %c0_i32_0 = arith.constant 0 : i32
    return %arg0, %c0_i32 : i32, i32
  }
}

</mosaic_0001>

<bundles_post_ra>
// kernel: tpu_custom_call.1
= control target key start
LH: loop header
LB: loop body
LE: loop exit
PB: predicated region body
PF: predicated region fallthrough
CT: control target
= control target key end

     0   :  { %vm134_vm0 = vcmask 1041408   ;;  %vm300_vm1 = vcmask 1043456   ;;  %vm109_vm2 = vcmask 31744   ;;  %vm275_vm3 = vcmask 64512   ;;  %s1193_s3 = inlined_call_operand.vmem [shape: bf16[4,128], index: 3, kind: input, shape index: {}]   ;;  %s1194_s2 = inlined_call_operand.vmem [shape: bf16[8,128], index: 2, kind: input, shape index: {}]   ;;  %s1195_s1 = inlined_call_operand.vmem [shape: bf16[128,4], index: 1, kind: input, shape index: {}]   ;;  %s1196_s0 = inlined_call_operand.vmem [shape: bf16[128,8], index: 0, kind: input, shape index: {}]   ;;  %s1197_s5 = inlined_call_operand.vmem [shape: bf16[128,128], index: 5, kind: input, shape index: {}]   ;;  %s1198_s4 = inlined_call_operand.vmem [shape: f32[1,128], index: 4, kind: input, shape index: {}]   ;;  %s1199_s8 = inlined_call_operand.<no memory space> [shape: f32[1,1], index: 8, kind: input, shape index: {}]   ;;  %s1200_s6 = inlined_call_operand.vmem [shape: f32[1,128], index: 6, kind: input, shape index: {}]   ;;  %s1201_s7 = inlined_call_operand.vmem [shape: f32[1,128], index: 7, kind: input, shape index: {}]   ;;  %s1202_s9 = inlined_call_operand.vmem [shape: f32[128,1], index: 9, kind: output, shape index: {}]  }
   0x1   :  { %v68_v0 = vld [vmem:[%s1193_s3] sm:$0x3]  ;;  %v897_v6 = vld [vmem:[%s1195_s1 + $0x8] sm:$0xff]   ;;  %v899_v8 = vld [vmem:[%s1195_s1 + $0x10] sm:$0xff]   ;;  %vm710_vm4 = vcmask 7168  }
   0x2   :  { %v51_v1 = vld [vmem:[%s1194_s2] sm:$0xf]  ;;  %893 = vmatprep.subr.msk.bf16.mxu0 %vm134_vm0, %v68_v0  ;;  %v136_v2 = vsel %vm134_vm0, %v68_v0, 0  ;;  %v898_v7 = vld [vmem:[%s1196_s0 + $0x8] sm:$0xff]   ;;  %v900_v9 = vld [vmem:[%s1196_s0 + $0x10] sm:$0xff]  }
   0x3   :  { %894 = vmatprep.subr.msk.bf16.mxu1 %vm300_vm1, %v51_v1  ;;  %v302_v3 = vsel %vm300_vm1, %v51_v1, 0  ;;  %v895_v4 = vld [vmem:[%s1195_s1] sm:$0xff]   ;;  %810 = vmatpush3.bf16.msra.mxu0 %v136_v2  ;;  %v901_v10 = vld [vmem:[%s1195_s1 + $0x18] sm:$0xff]   ;;  %v905_v14 = vld [vmem:[%s1195_s1 + $0x28] sm:$0xff]  }
   0x4   :  { %v896_v5 = vld [vmem:[%s1196_s0] sm:$0xff]   ;;  %828 = vmatpush3.bf16.msra.mxu1 %v302_v3  ;;  %811 = vmatprep.mubr.msk.bf16.mxu0 %vm109_vm2, %v895_v4  ;;  %v902_v11 = vld [vmem:[%s1196_s0 + $0x18] sm:$0xff]   ;;  %v906_v15 = vld [vmem:[%s1196_s0 + $0x28] sm:$0xff]  }
   0x5   :  { %829 = vmatprep.mubr.msk.bf16.mxu1 %vm275_vm3, %v896_v5  ;;  %v903_v12 = vld [vmem:[%s1195_s1 + $0x20] sm:$0xff]   ;;  %v907_v16 = vld [vmem:[%s1195_s1 + $0x30] sm:$0xff]   ;;  %v911_v17 = vld [vmem:[%s1197_s5 + $0x38] sm:$0xff]  }
   0x6   :  { %812 = vmatmul.mubr.msk.bf16.vlgmr.msra.gmra.mxu0 %vm109_vm2, %v897_v6  ;;  %v904_v13 = vld [vmem:[%s1196_s0 + $0x20] sm:$0xff]   ;;  %v912_v18 = vld [vmem:[%s1197_s5 + $0x30] sm:$0xff]   ;;  %845 = vmatprep.subr.bf16.mxu0 %v911_v17  ;;  %v913_v20 = vld [vmem:[%s1197_s5 + $0x28] sm:$0xff]  }
   0x7   :  { %830 = vmatmul.mubr.msk.bf16.vlgmr.msra.gmra.mxu1 %vm275_vm3, %v898_v7  ;;  %815 = vmatprep.mubr.msk.bf16.mxu0 %vm109_vm2, %v899_v8  ;;  %v908_v19 = vld [vmem:[%s1196_s0 + $0x30] sm:$0xff]   ;;  %v909_v21 = vld [vmem:[%s1195_s1 + $0x38] sm:$0xff]   ;;  %v914_v22 = vld [vmem:[%s1197_s5 + $0x20] sm:$0xff]  }
   0x8   :  { %833 = vmatprep.mubr.msk.bf16.mxu1 %vm275_vm3, %v900_v9  ;;  %877 = vmatprep.subr.bf16.mxu1 %v911_v17  ;;  %v910_v23 = vld [vmem:[%s1196_s0 + $0x38] sm:$0xff]   ;;  %v916_v25 = vld [vmem:[%s1197_s5 + $0x10] sm:$0xff]   ;;  %v917_v26 = vld [vmem:[%s1197_s5 + $0x8] sm:$0xff]  }
   0x9   :  { %846 = vmatpush3.bf16.msra.mxu0 %v911_v17  ;;  %885 = vmatpush3.bf16.msra.mxu1 %v911_v17  ;;  %v915_v24 = vld [vmem:[%s1197_s5 + $0x18] sm:$0xff]   ;;  %v918_v27 = vld [vmem:[%s1197_s5] sm:$0xff]  }
   0xa   :  { %847 = vmatprep.subr.bf16.mxu0 %v912_v18  ;;  %878 = vmatprep.subr.bf16.mxu1 %v912_v18  ;;  %v1066_v36 = vld [vmem:[%s1198_s4] ss:$0 sm:$0xff] }
   0xd   :  { %848 = vmatpush3.bf16.msra.mxu0 %v912_v18  ;;  %886 = vmatpush3.bf16.msra.mxu1 %v912_v18 }
   0xe   :  { %816 = vmatmul.mubr.msk.bf16.gmra.mxu0 %vm109_vm2, %v901_v10  ;;  %849 = vmatprep.subr.bf16.mxu0 %v913_v20 }
   0xf   :  { %834 = vmatmul.mubr.msk.bf16.gmra.mxu1 %vm275_vm3, %v902_v11  ;;  %819 = vmatprep.mubr.msk.bf16.mxu0 %vm109_vm2, %v903_v12 }
  0x10   :  { %837 = vmatprep.mubr.msk.bf16.mxu1 %vm275_vm3, %v904_v13  ;;  %879 = vmatprep.subr.bf16.mxu1 %v913_v20 }
  0x11   :  { %850 = vmatpush3.bf16.msra.mxu0 %v913_v20  ;;  %887 = vmatpush3.bf16.msra.mxu1 %v913_v20 }
  0x12   :  { %851 = vmatprep.subr.bf16.mxu0 %v914_v22  ;;  %880 = vmatprep.subr.bf16.mxu1 %v914_v22 }
  0x15   :  { %852 = vmatpush3.bf16.msra.mxu0 %v914_v22  ;;  %888 = vmatpush3.bf16.msra.mxu1 %v914_v22 }
  0x16   :  { %820 = vmatmul.mubr.msk.bf16.gmra.mxu0 %vm109_vm2, %v905_v14  ;;  %853 = vmatprep.subr.bf16.mxu0 %v915_v24 }
  0x17   :  { %838 = vmatmul.mubr.msk.bf16.gmra.mxu1 %vm275_vm3, %v906_v15  ;;  %823 = vmatprep.mubr.msk.bf16.mxu0 %vm109_vm2, %v907_v16 }
  0x18   :  { %841 = vmatprep.mubr.msk.bf16.mxu1 %vm275_vm3, %v908_v19  ;;  %881 = vmatprep.subr.bf16.mxu1 %v915_v24 }
  0x19   :  { %854 = vmatpush3.bf16.msra.mxu0 %v915_v24  ;;  %889 = vmatpush3.bf16.msra.mxu1 %v915_v24 }
  0x1a   :  { %855 = vmatprep.subr.bf16.mxu0 %v916_v25  ;;  %882 = vmatprep.subr.bf16.mxu1 %v916_v25 }
  0x1d   :  { %856 = vmatpush3.bf16.msra.mxu0 %v916_v25  ;;  %890 = vmatpush3.bf16.msra.mxu1 %v916_v25 }
  0x1e   :  { %824 = vmatmul.mubr.msk.bf16.gmra.mxu0 %vm109_vm2, %v909_v21  ;;  %857 = vmatprep.subr.bf16.mxu0 %v917_v26 }
  0x1f   :  { %842 = vmatmul.mubr.msk.bf16.gmra.mxu1 %vm275_vm3, %v910_v23  ;;  %883 = vmatprep.subr.bf16.mxu1 %v917_v26 }
  0x21   :  { %858 = vmatpush3.bf16.msra.mxu0 %v917_v26  ;;  %891 = vmatpush3.bf16.msra.mxu1 %v917_v26 }
  0x22   :  { %859 = vmatprep.subr.bf16.mxu0 %v918_v27  ;;  %884 = vmatprep.subr.bf16.mxu1 %v918_v27 }
  0x25   :  { %860 = vmatpush3.bf16.msra.mxu0 %v918_v27  ;;  %892 = vmatpush3.bf16.msra.mxu1 %v918_v27 }
  0xc6   :  { %v813_v28 = vpop.f32.mrf.mxu0 }
  0xc7   :  { %v831_v29 = vpop.f32.mrf.mxu1 }
  0xc8   :  { %v172_v30 = vpop.f32.mrf.mxu0  ;;  %v347_v34 = vadd.f32 %v831_v29, %v813_v28 }
  0xc9   :  { %v338_v31 = vpop.f32.mrf.mxu1 }
  0xca   :  { %v339_v32 = vadd.f32 %v338_v31, %v172_v30  ;;  %v814_v33 = vpop.f32.mrf.mxu0  ;;  %v410_v44 = vadd.f32 %v1066_v36, %v347_v34 }
  0xcb   :  { %v832_v35 = vpop.f32.mrf.mxu1 }
  0xcc   :  { %v350_v37 = vadd.f32 %v832_v35, %v814_v33  ;;  %v175_v38 = vpop.f32.mrf.mxu0  ;;  %v408_v40 = vadd.f32 %v1066_v36, %v339_v32  ;;  %v426_v54 = vmax.f32 %v410_v44, 0.0 }
  0xcd   :  { %v341_v39 = vpop.f32.mrf.mxu1 }
  0xce   :  { %v411_v41 = vadd.f32 %v1066_v36, %v350_v37  ;;  %v342_v42 = vadd.f32 %v341_v39, %v175_v38  ;;  %v817_v43 = vpop.f32.mrf.mxu0  ;;  %v424_v50 = vmax.f32 %v408_v40, 0.0 }
  0xcf   :  { %v835_v45 = vpop.f32.mrf.mxu1 }
  0xd0   :  { %v409_v46 = vadd.f32 %v1066_v36, %v342_v42  ;;  %v188_v47 = vpop.f32.mrf.mxu0  ;;  %v427_v48 = vmax.f32 %v411_v41, 0.0  ;;  %v363_v55 = vadd.f32 %v835_v45, %v817_v43 }
  0xd1   :  { %v354_v49 = vpop.f32.mrf.mxu1 }
  0xd2   :  { %v425_v51 = vmax.f32 %v409_v46, 0.0  ;;  %v355_v52 = vadd.f32 %v354_v49, %v188_v47  ;;  %v818_v53 = vpop.f32.mrf.mxu0  ;;  %v441_v60 = vpack.c.bf16 %v427_v48, %v426_v54  ;;  %v414_v2 = vadd.f32 %v1066_v36, %v363_v55  ;;  %v1090_v55 = vld [vmem:[%s1200_s6] ss:$0 sm:$0xff] }
  0xd3   :  { %v836_v56 = vpop.f32.mrf.mxu1  ;;  %v14_v54 = vstv %s1199_s8 }
  0xd4   :  { %v366_v57 = vadd.f32 %v836_v56, %v818_v53  ;;  %v191_v58 = vpop.f32.mrf.mxu0  ;;  %v440_v59 = vpack.c.bf16 %v425_v51, %v424_v50  ;;  %v412_v62 = vadd.f32 %v1066_v36, %v355_v52  ;;  %v430_v12 = vmax.f32 %v414_v2, 0.0  ;;  %15 = vst [vmem:[#allocation2] sm:$0x1] %v14_v54 }
  0xd5   :  { %v357_v61 = vpop.f32.mrf.mxu1 }
  0xd6   :  { %v415_v63 = vadd.f32 %v1066_v36, %v366_v57  ;;  %v358_v0 = vadd.f32 %v357_v61, %v191_v58  ;;  %861 = vmatprep.mubr.bf16.mxu0 %v440_v59  ;;  %v821_v1 = vpop.f32.mrf.mxu0  ;;  %v428_v8 = vmax.f32 %v412_v62, 0.0  ;;  %v1096_v58 = vld [vmem:[%s1201_s7] ss:$0 sm:$0xff] }
  0xd7   :  { %v839_v3 = vpop.f32.mrf.mxu1  ;;  %862 = vmatmul.mubr.bf16.vlgmr.msra.gmra.mxu0 %v441_v60 }
  0xd8   :  { %v413_v4 = vadd.f32 %v1066_v36, %v358_v0  ;;  %v204_v5 = vpop.f32.mrf.mxu0  ;;  %v431_v6 = vmax.f32 %v415_v63, 0.0  ;;  %v379_v13 = vadd.f32 %v839_v3, %v821_v1 }
  0xd9   :  { %v370_v7 = vpop.f32.mrf.mxu1 }
  0xda   :  { %v429_v9 = vmax.f32 %v413_v4, 0.0  ;;  %v371_v10 = vadd.f32 %v370_v7, %v204_v5  ;;  %v822_v11 = vpop.f32.mrf.mxu0  ;;  %v443_v19 = vpack.c.bf16 %v431_v6, %v430_v12  ;;  %v418_v24 = vadd.f32 %v1066_v36, %v379_v13 }
  0xdb   :  { %v840_v14 = vpop.f32.mrf.mxu1 }
  0xdc   :  { %v382_v15 = vadd.f32 %v840_v14, %v822_v11  ;;  %v207_v16 = vpop.f32.mrf.mxu0  ;;  %v442_v17 = vpack.c.bf16 %v429_v9, %v428_v8  ;;  %v416_v20 = vadd.f32 %v1066_v36, %v371_v10  ;;  %v434_v34 = vmax.f32 %v418_v24, 0.0 }
  0xdd   :  { %v373_v18 = vpop.f32.mrf.mxu1 }
  0xde   :  { %v419_v21 = vadd.f32 %v1066_v36, %v382_v15  ;;  %v374_v22 = vadd.f32 %v373_v18, %v207_v16  ;;  %865 = vmatprep.mubr.bf16.mxu0 %v442_v17  ;;  %v825_v23 = vpop.f32.mrf.mxu0  ;;  %v432_v30 = vmax.f32 %v416_v20, 0.0 }
  0xdf   :  { %v843_v25 = vpop.f32.mrf.mxu1  ;;  %866 = vmatmul.mubr.bf16.gmra.mxu0 %v443_v19 }
  0xe0   :  { %v417_v26 = vadd.f32 %v1066_v36, %v374_v22  ;;  %v220_v27 = vpop.f32.mrf.mxu0  ;;  %v435_v28 = vmax.f32 %v419_v21, 0.0  ;;  %v395_v35 = vadd.f32 %v843_v25, %v825_v23 }
  0xe1   :  { %v386_v29 = vpop.f32.mrf.mxu1 }
  0xe2   :  { %v433_v31 = vmax.f32 %v417_v26, 0.0  ;;  %v387_v32 = vadd.f32 %v386_v29, %v220_v27  ;;  %v826_v33 = vpop.f32.mrf.mxu0  ;;  %v445_v41 = vpack.c.bf16 %v435_v28, %v434_v34  ;;  %v422_v46 = vadd.f32 %v1066_v36, %v395_v35 }
  0xe3   :  { %v844_v37 = vpop.f32.mrf.mxu1 }
  0xe4   :  { %v398_v38 = vadd.f32 %v844_v37, %v826_v33  ;;  %v223_v39 = vpop.f32.mrf.mxu0  ;;  %v444_v40 = vpack.c.bf16 %v433_v31, %v432_v30  ;;  %v420_v43 = vadd.f32 %v1066_v36, %v387_v32  ;;  %v438_v51 = vmax.f32 %v422_v46, 0.0 }
  0xe5   :  { %v389_v42 = vpop.f32.mrf.mxu1 }
  0xe6   :  { %v423_v44 = vadd.f32 %v1066_v36, %v398_v38  ;;  %v390_v45 = vadd.f32 %v389_v42, %v223_v39  ;;  %869 = vmatprep.mubr.bf16.mxu1 %v444_v40  ;;  %v436_v49 = vmax.f32 %v420_v43, 0.0 }
  0xe7   :  { %870 = vmatmul.mubr.bf16.vlgmr.msra.gmra.mxu1 %v445_v41 }
  0xe8   :  { %v421_v47 = vadd.f32 %v1066_v36, %v390_v45  ;;  %v439_v48 = vmax.f32 %v423_v44, 0.0 }
  0xea   :  { %v437_v50 = vmax.f32 %v421_v47, 0.0  ;;  %v447_v53 = vpack.c.bf16 %v439_v48, %v438_v51 }
  0xec   :  { %v446_v52 = vpack.c.bf16 %v437_v50, %v436_v49 }
  0xee   :  { %873 = vmatprep.mubr.bf16.mxu1 %v446_v52 }
  0xef   :  { %874 = vmatmul.mubr.bf16.gmra.mxu1 %v447_v53 }
 0x197   :  { %v863_v56 = vpop.f32.mrf.mxu0 }
 0x198   :  { %v562_v36 = vadd.f32 %v863_v56, %v1090_v55 }
 0x199   :  { %v553_v57 = vpop.f32.mrf.mxu0 }
 0x19a   :  { %v618_v59 = vmax.f32 %v562_v36, 0.0  ;;  %v554_v60 = vadd.f32 %v1090_v55, %v553_v57  ;;  %v774_v57 = vld [vmem:[#allocation2] ss:$0 sm:$0xff] }
 0x19b   :  { %v864_v61 = vpop.f32.mrf.mxu0 }
 0x19c   :  { %v616_v62 = vmax.f32 %v554_v60, 0.0  ;;  %v565_v63 = vadd.f32 %v864_v61, %v1090_v55  ;;  %v641_v0 = vmul.f32 %v1096_v58, %v618_v59 }
 0x19d   :  { %v556_v1 = vpop.f32.mrf.mxu0 }
 0x19e   :  { %v619_v2 = vmax.f32 %v565_v63, 0.0  ;;  %v557_v3 = vadd.f32 %v1090_v55, %v556_v1  ;;  %659 = vadd.xlane.f32.xlu1 %v641_v0  ;;  %v639_v4 = vmul.f32 %v1096_v58, %v616_v62 }
 0x19f   :  { %v867_v5 = vpop.f32.mrf.mxu0 }
 0x1a0   :  { %v617_v6 = vmax.f32 %v557_v3, 0.0  ;;  %v578_v7 = vadd.f32 %v867_v5, %v1090_v55  ;;  %655 = vadd.xlane.f32.xlu0 %v639_v4  ;;  %v642_v8 = vmul.f32 %v1096_v58, %v619_v2 }
 0x1a1   :  { %v569_v9 = vpop.f32.mrf.mxu0 }
 0x1a2   :  { %v622_v10 = vmax.f32 %v578_v7, 0.0  ;;  %v570_v11 = vadd.f32 %v1090_v55, %v569_v9  ;;  %661 = vadd.xlane.f32.xlu1 %v642_v8  ;;  %v640_v12 = vmul.f32 %v1096_v58, %v617_v6 }
 0x1a3   :  { %v868_v13 = vpop.f32.mrf.mxu0 }
 0x1a4   :  { %v581_v14 = vadd.f32 %v868_v13, %v1090_v55  ;;  %657 = vadd.xlane.f32.xlu0 %v640_v12  ;;  %v620_v16 = vmax.f32 %v570_v11, 0.0  ;;  %v645_v19 = vmul.f32 %v1096_v58, %v622_v10 }
 0x1a5   :  { %v572_v15 = vpop.f32.mrf.mxu0 }
 0x1a6   :  { %v623_v17 = vmax.f32 %v581_v14, 0.0  ;;  %v573_v18 = vadd.f32 %v1090_v55, %v572_v15  ;;  %v643_v27 = vmul.f32 %v1096_v58, %v620_v16 }
 0x1a7   :  { %v871_v20 = vpop.f32.mrf.mxu1 }
 0x1a8   :  { %v621_v21 = vmax.f32 %v573_v18, 0.0  ;;  %v594_v22 = vadd.f32 %v871_v20, %v1090_v55  ;;  %667 = vadd.xlane.f32.xlu0 %v645_v19  ;;  %v646_v23 = vmul.f32 %v1096_v58, %v623_v17 }
 0x1a9   :  { %v585_v24 = vpop.f32.mrf.mxu1 }
 0x1aa   :  { %v626_v25 = vmax.f32 %v594_v22, 0.0  ;;  %v586_v26 = vadd.f32 %v1090_v55, %v585_v24  ;;  %669 = vadd.xlane.f32.xlu1 %v646_v23  ;;  %v644_v30 = vmul.f32 %v1096_v58, %v621_v21 }
 0x1ab   :  { %v872_v28 = vpop.f32.mrf.mxu1 }
 0x1ac   :  { %v597_v29 = vadd.f32 %v872_v28, %v1090_v55  ;;  %663 = vadd.xlane.f32.xlu0 %v643_v27  ;;  %v624_v32 = vmax.f32 %v586_v26, 0.0  ;;  %v649_v35 = vmul.f32 %v1096_v58, %v626_v25 }
 0x1ad   :  { %v588_v31 = vpop.f32.mrf.mxu1 }
 0x1ae   :  { %v627_v33 = vmax.f32 %v597_v29, 0.0  ;;  %v589_v34 = vadd.f32 %v1090_v55, %v588_v31  ;;  %665 = vadd.xlane.f32.xlu1 %v644_v30  ;;  %v647_v43 = vmul.f32 %v1096_v58, %v624_v32 }
 0x1af   :  { %v875_v37 = vpop.f32.mrf.mxu1 }
 0x1b0   :  { %v625_v38 = vmax.f32 %v589_v34, 0.0  ;;  %675 = vadd.xlane.f32.xlu0 %v649_v35  ;;  %v650_v39 = vmul.f32 %v1096_v58, %v627_v33  ;;  %v610_v41 = vadd.f32 %v875_v37, %v1090_v55 }
 0x1b1   :  { %v601_v40 = vpop.f32.mrf.mxu1 }
 0x1b2   :  { %v602_v42 = vadd.f32 %v1090_v55, %v601_v40  ;;  %677 = vadd.xlane.f32.xlu1 %v650_v39  ;;  %v648_v46 = vmul.f32 %v1096_v58, %v625_v38  ;;  %v630_v48 = vmax.f32 %v610_v41, 0.0 }
 0x1b3   :  { %v876_v44 = vpop.f32.mrf.mxu1 }
 0x1b4   :  { %v628_v45 = vmax.f32 %v602_v42, 0.0  ;;  %671 = vadd.xlane.f32.xlu0 %v647_v43  ;;  %v613_v49 = vadd.f32 %v876_v44, %v1090_v55  ;;  %v653_v56 = vmul.f32 %v1096_v58, %v630_v48 }
 0x1b5   :  { %v604_v47 = vpop.f32.mrf.mxu1 }
 0x1b6   :  { %v605_v50 = vadd.f32 %v1090_v55, %v604_v47  ;;  %673 = vadd.xlane.f32.xlu1 %v648_v46  ;;  %v651_v51 = vmul.f32 %v1096_v58, %v628_v45  ;;  %v631_v53 = vmax.f32 %v613_v49, 0.0 }
 0x1b8   :  { %v629_v52 = vmax.f32 %v605_v50, 0.0  ;;  %679 = vadd.xlane.f32.xlu0 %v651_v51  ;;  %v654_v36 = vmul.f32 %v1096_v58, %v631_v53 }
 0x1ba   :  { %v652_v54 = vmul.f32 %v1096_v58, %v629_v52 }
 0x1bc   :  { %681 = vadd.xlane.f32.xlu1 %v652_v54  ;;  %683 = vadd.xlane.f32.xlu0 %v653_v56 }
 0x1c0   :  { %685 = vadd.xlane.f32.xlu1 %v654_v36 }
 0x227   :  { %v660_v59 = vpop.xlane.xlu1 %659 }
 0x228   :  { %v696_v60 = vadd.f32 %v774_v57, %v660_v59 }
 0x229   :  { %v656_v55 = vpop.xlane.xlu0 %655 }
 0x22a   :  { %713 = vst.msk [vmem:[%s1202_s9 + $0x10] sm:$0xff] %vm710_vm4, %v696_v60  ;;  %v694_v61 = vadd.f32 %v774_v57, %v656_v55 }
 0x22b   :  { %v662_v62 = vpop.xlane.xlu1 %661 }
 0x22c   :  { %711 = vst.msk [vmem:[%s1202_s9] sm:$0xff] %vm710_vm4, %v694_v61  ;;  %v697_v63 = vadd.f32 %v774_v57, %v662_v62 }
 0x22d   :  { %v658_v58 = vpop.xlane.xlu0 %657 }
 0x22e   :  { %714 = vst.msk [vmem:[%s1202_s9 + $0x18] sm:$0xff] %vm710_vm4, %v697_v63  ;;  %v695_v0 = vadd.f32 %v774_v57, %v658_v58 }
 0x230   :  { %712 = vst.msk [vmem:[%s1202_s9 + $0x8] sm:$0xff] %vm710_vm4, %v695_v0 }
 0x231   :  { %v668_v1 = vpop.xlane.xlu0 %667 }
 0x232   :  { %v700_v2 = vadd.f32 %v774_v57, %v668_v1 }
 0x233   :  { %v670_v3 = vpop.xlane.xlu1 %669 }
 0x234   :  { %717 = vst.msk [vmem:[%s1202_s9 + $0x30] sm:$0xff] %vm710_vm4, %v700_v2  ;;  %v701_v4 = vadd.f32 %v774_v57, %v670_v3 }
 0x235   :  { %v664_v5 = vpop.xlane.xlu0 %663 }
 0x236   :  { %718 = vst.msk [vmem:[%s1202_s9 + $0x38] sm:$0xff] %vm710_vm4, %v701_v4  ;;  %v698_v6 = vadd.f32 %v774_v57, %v664_v5 }
 0x237   :  { %v666_v7 = vpop.xlane.xlu1 %665 }
 0x238   :  { %715 = vst.msk [vmem:[%s1202_s9 + $0x20] sm:$0xff] %vm710_vm4, %v698_v6  ;;  %v699_v8 = vadd.f32 %v774_v57, %v666_v7 }
 0x239   :  { %v676_v9 = vpop.xlane.xlu0 %675 }
 0x23a   :  { %716 = vst.msk [vmem:[%s1202_s9 + $0x28] sm:$0xff] %vm710_vm4, %v699_v8  ;;  %v704_v10 = vadd.f32 %v774_v57, %v676_v9 }
 0x23b   :  { %v678_v11 = vpop.xlane.xlu1 %677 }
 0x23c   :  { %721 = vst.msk [vmem:[%s1202_s9 + $0x50] sm:$0xff] %vm710_vm4, %v704_v10  ;;  %v705_v12 = vadd.f32 %v774_v57, %v678_v11 }
 0x23d   :  { %v672_v13 = vpop.xlane.xlu0 %671 }
 0x23e   :  { %722 = vst.msk [vmem:[%s1202_s9 + $0x58] sm:$0xff] %vm710_vm4, %v705_v12  ;;  %v702_v14 = vadd.f32 %v774_v57, %v672_v13 }
 0x23f   :  { %v674_v15 = vpop.xlane.xlu1 %673 }
 0x240   :  { %719 = vst.msk [vmem:[%s1202_s9 + $0x40] sm:$0xff] %vm710_vm4, %v702_v14  ;;  %v703_v16 = vadd.f32 %v774_v57, %v674_v15 }
 0x241   :  { %v680_v17 = vpop.xlane.xlu0 %679 }
 0x242   :  { %720 = vst.msk [vmem:[%s1202_s9 + $0x48] sm:$0xff] %vm710_vm4, %v703_v16  ;;  %v706_v18 = vadd.f32 %v774_v57, %v680_v17 }
 0x244   :  { %723 = vst.msk [vmem:[%s1202_s9 + $0x60] sm:$0xff] %vm710_vm4, %v706_v18 }
 0x245   :  { %v682_v19 = vpop.xlane.xlu1 %681  ;;  %v684_v20 = vpop.xlane.xlu0 %683 }
 0x246   :  { %v707_v21 = vadd.f32 %v774_v57, %v682_v19  ;;  %v708_v22 = vadd.f32 %v774_v57, %v684_v20 }
 0x248   :  { %724 = vst.msk [vmem:[%s1202_s9 + $0x68] sm:$0xff] %vm710_vm4, %v707_v21  ;;  %725 = vst.msk [vmem:[%s1202_s9 + $0x70] sm:$0xff] %vm710_vm4, %v708_v22 }
 0x249   :  { %v686_v23 = vpop.xlane.xlu1 %685 }
 0x24a   :  { %v709_v24 = vadd.f32 %v774_v57, %v686_v23 }
 0x24c   :  { %726 = vst.msk [vmem:[%s1202_s9 + $0x78] sm:$0xff] %vm710_vm4, %v709_v24 }

</bundles_post_ra>
